<compile_context>
chip_gen: v5e
topology: v5e:2x2
jax: 0.10.0
libtpu: 0.0.40
codegen_flags: <defaults>
</compile_context>

<pallas_src>
import functools

import jax
import jax.numpy as jnp
from jax.experimental import pallas as pl
from jax.experimental.pallas import tpu as pltpu

LANE_WIDTH = 512           # lane-dense slab width (multiple of 128 -> unmasked full-width vst)
MIN_PALLAS_ELEMS = 32768   # below this, fused jnp wins (pallas_call dispatch overhead dominates)


def _round_up(x, m):
    return (x + m - 1) // m * m


@functools.lru_cache(maxsize=None)
def _vmem_capacity_bytes():
    try:
        return int(pltpu.get_tpu_info().vmem_capacity_bytes)
    except Exception:
        return 128 << 20   # assume v5e/v6e-like -> conservative 2 MiB blocks (safe everywhere)


def _laplace_density_kernel(scalars_ref, sdf_ref, out_ref):
    """Elementwise Laplace-CDF density on one [row_blk, LANE_WIDTH] tile.

    scalars_ref (SMEM via scalar prefetch, shape (3,)): [0.5*alpha, alpha, -1/beta].
    Compute in f32; cast on store (supports f32 and bf16 I/O).
    """
    half_alpha = scalars_ref[0]
    alpha = scalars_ref[1]
    neg_inv_beta = scalars_ref[2]
    s = sdf_ref[...].astype(jnp.float32)
    t = half_alpha * jnp.exp(jnp.abs(s) * neg_inv_beta)      # (0.5/beta) * exp(-|s|/beta)
    out_ref[...] = jnp.where(s >= 0.0, t, alpha - t).astype(out_ref.dtype)


def _laplace_density_jnp(sdf, beta):
    """Fused fallback path (tiny, lane-ragged, per-element beta, or exotic dtype).

    Same math, single HBM pass via XLA fusion; output keeps the input dtype.
    """
    s = sdf.astype(jnp.float32)
    beta = jnp.asarray(beta, jnp.float32)
    alpha = 1.0 / beta
    e = jnp.exp(-jnp.abs(s) / beta)
    dens = alpha * jnp.where(s >= 0.0, 0.5 * e, 1.0 - 0.5 * e)
    return dens.astype(sdf.dtype)


def _pick_tiling(rows, itemsize):
    """Return (row_blk, vmem_limit_bytes) gated on chip generation."""
    if _vmem_capacity_bytes() <= (64 << 20):
        # v7x-like: 3.2 TB/s HBM makes ~0.35us/step overhead a 25-30% tax at 2 MiB
        # blocks, and the two TensorCores each want >= 2 grid steps for overlap.
        target_block_bytes, min_steps = 8 << 20, 4
    else:
        # v5e / v6e: 2 MiB blocks already reach ~85%+ of HBM roofline.
        target_block_bytes, min_steps = 2 << 20, 2
    sub = max(8, 32 // itemsize)                              # 8 for f32, 16 for bf16
    max_rows = max(sub, target_block_bytes // (LANE_WIDTH * itemsize))
    row_blk = min(max_rows, _round_up(pl.cdiv(rows, min_steps), sub))
    row_blk = min(row_blk, _round_up(rows, sub))
    block_bytes = row_blk * LANE_WIDTH * itemsize
    # double-buffered in + out = 4 * block, plus headroom; always under physical VMEM.
    vmem_limit = max(4 * block_bytes + (8 << 20), 32 << 20)
    return row_blk, int(vmem_limit)


def laplace_density(sdf, beta_param, beta_min_param, beta=None):
    """JAX wrapper mirroring LaplaceDensity.forward.

    sdf:            float32/bfloat16 (or other float) array, arbitrary shape [bs...]
    beta_param:     shape (1,) learnable beta
    beta_min_param: shape (1,) fixed beta_min
    beta:           optional override; scalar or per-element array broadcastable to sdf
    """
    if beta is None:
        beta_val = (jnp.abs(beta_param) + beta_min_param).reshape(()).astype(jnp.float32)
    else:
        beta_arr = jnp.asarray(beta, jnp.float32)
        if beta_arr.size != 1:
            # Per-element beta (TensorType['bs':...]) — broadcast exactly like PyTorch.
            # TODO(synk): per-element beta is not routed through the Pallas kernel.
            return _laplace_density_jnp(sdf, beta_arr)
        beta_val = beta_arr.reshape(())

    n = int(sdf.size)
    io_dtype = sdf.dtype
    use_pallas = (
        io_dtype in (jnp.float32, jnp.bfloat16)
        and n >= MIN_PALLAS_ELEMS
        and n % LANE_WIDTH == 0
    )
    if not use_pallas:
        # Note: output keeps sdf's dtype (PyTorch would promote sub-f32 inputs to f32).
        return _laplace_density_jnp(sdf, beta_val)

    alpha = 1.0 / beta_val
    scalars = jnp.stack([0.5 * alpha, alpha, -alpha]).astype(jnp.float32)   # (3,)

    orig_shape = sdf.shape
    slab = sdf.reshape(-1, LANE_WIDTH)          # free bitcast: no pad, no copy
    rows = slab.shape[0]
    row_blk, vmem_limit = _pick_tiling(rows, slab.dtype.itemsize)
    grid = (pl.cdiv(rows, row_blk),)            # ragged last row-block -> masked writeback

    out = pl.pallas_call(
        _laplace_density_kernel,
        out_shape=jax.ShapeDtypeStruct((rows, LANE_WIDTH), io_dtype),
        grid_spec=pltpu.PrefetchScalarGridSpec(
            num_scalar_prefetch=1,
            grid=grid,
            in_specs=[pl.BlockSpec((row_blk, LANE_WIDTH), lambda i, s: (i, 0))],
            out_specs=pl.BlockSpec((row_blk, LANE_WIDTH), lambda i, s: (i, 0)),
        ),
        compiler_params=pltpu.CompilerParams(
            dimension_semantics=("parallel",),
            vmem_limit_bytes=vmem_limit),
    )(scalars, slab)

    return out.reshape(orig_shape)


def _reference(sdf, beta):
    sdf = sdf.astype(jnp.float32)
    beta = jnp.asarray(beta, jnp.float32)
    alpha = 1.0 / beta
    return alpha * (0.5 + 0.5 * jnp.sign(sdf) * jnp.expm1(-jnp.abs(sdf) / beta))


if __name__ == "__main__":
    # Deterministic "parameter init" mirroring __init__(init_val, beta_min)
    init_val = 0.1
    beta_min = 1e-4
    beta_param = init_val * jnp.ones((1,), jnp.float32)
    beta_min_param = beta_min * jnp.ones((1,), jnp.float32)
    beta_learned = (jnp.abs(beta_param) + beta_min_param).reshape(())

    key = jax.random.PRNGKey(0)
    k1, k2, k3, k4 = jax.random.split(key, 4)

    # Case 1: nerfstudio-style sdf [num_rays, samples_per_ray, 1] — Pallas path,
    # 65536 elems, lane-aligned, >= 2 grid steps.
    sdf1 = jax.random.normal(k1, (128, 512, 1), dtype=jnp.float32) * 0.5
    dens1 = jax.block_until_ready(laplace_density(sdf1, beta_param, beta_min_param))
    ref1 = _reference(sdf1, beta_learned)
    assert dens1.shape == sdf1.shape and dens1.dtype == jnp.float32
    assert jnp.allclose(dens1, ref1, rtol=1e-4, atol=1e-5)

    # Case 2: Pallas path with a ragged last row-block (rows=200, not a multiple
    # of the chosen row block) — exercises masked writeback, no pad/slice.
    sdf2 = jax.random.normal(k2, (100, 1024, 1), dtype=jnp.float32) * 0.3
    dens2 = jax.block_until_ready(laplace_density(sdf2, beta_param, beta_min_param))
    ref2 = _reference(sdf2, beta_learned)
    assert dens2.shape == sdf2.shape
    assert jnp.allclose(dens2, ref2, rtol=1e-4, atol=1e-5)

    # Case 3: tiny + lane-ragged input -> fused jnp fallback (no custom-call overhead).
    sdf3 = jax.random.normal(k3, (4, 100, 3), dtype=jnp.float32) * 0.4
    dens3 = jax.block_until_ready(laplace_density(sdf3, beta_param, beta_min_param))
    ref3 = _reference(sdf3, beta_learned)
    assert dens3.shape == sdf3.shape
    assert jnp.allclose(dens3, ref3, rtol=1e-4, atol=1e-5)

    # Case 4: explicit scalar beta override (Pallas path).
    dens4 = jax.block_until_ready(
        laplace_density(sdf1, beta_param, beta_min_param, beta=0.05))
    ref4 = _reference(sdf1, jnp.float32(0.05))
    assert jnp.allclose(dens4, ref4, rtol=1e-4, atol=1e-5)

    # Case 5: bf16 I/O on the Pallas path (compute stays f32 in-kernel).
    sdf5 = sdf1.astype(jnp.bfloat16)
    dens5 = jax.block_until_ready(laplace_density(sdf5, beta_param, beta_min_param))
    ref5 = _reference(sdf5, beta_learned)
    assert dens5.dtype == jnp.bfloat16 and dens5.shape == sdf5.shape
    assert jnp.allclose(dens5.astype(jnp.float32), ref5, rtol=2e-2, atol=2e-2)

    # Case 6: per-element beta override (PyTorch broadcasting semantics) -> jnp path.
    beta_pe = 0.05 + 0.1 * jax.random.uniform(k4, sdf1.shape, dtype=jnp.float32)
    dens6 = jax.block_until_ready(
        laplace_density(sdf1, beta_param, beta_min_param, beta=beta_pe))
    ref6 = _reference(sdf1, beta_pe)
    assert dens6.shape == sdf1.shape
    assert jnp.allclose(dens6, ref6, rtol=1e-4, atol=1e-5)

    print("KERNEL_OK")
</pallas_src>

<mosaic_0001>
module attributes {stable_mosaic.version = 11 : i64} {
  func.func @_laplace_density_kernel(%arg0: i32, %arg1: memref<3xf32, #tpu.memory_space<smem>>, %arg2: memref<64x512xf32, #tpu.memory_space<vmem>>, %arg3: memref<64x512xf32, #tpu.memory_space<vmem>>) attributes {dimension_semantics = [#tpu.dimension_semantics<parallel>], iteration_bounds = array<i64: 2>, scalar_prefetch = 1 : i64, scratch_operands = 0 : i64, tpu.core_type = #tpu.core_type<tc>, window_params = [{transform_indices = @transform_0, window_bounds = array<i64: 64, 512>}, {transform_indices = @transform_1, window_bounds = array<i64: 64, 512>}]} {
    %c0 = arith.constant 0 : index
    %0 = memref.load %arg1[%c0] : memref<3xf32, #tpu.memory_space<smem>>
    %c1 = arith.constant 1 : index
    %1 = memref.load %arg1[%c1] : memref<3xf32, #tpu.memory_space<smem>>
    %c2 = arith.constant 2 : index
    %2 = memref.load %arg1[%c2] : memref<3xf32, #tpu.memory_space<smem>>
    %c0_0 = arith.constant 0 : index
    %c0_1 = arith.constant 0 : index
    %3 = vector.load %arg2[%c0_0, %c0_1] : memref<64x512xf32, #tpu.memory_space<vmem>>, vector<64x512xf32>
    %4 = math.absf %3 : vector<64x512xf32>
    %5 = vector.broadcast %2 : f32 to vector<64x512xf32>
    %6 = arith.mulf %4, %5 : vector<64x512xf32>
    %7 = math.exp %6 : vector<64x512xf32>
    %8 = vector.broadcast %0 : f32 to vector<64x512xf32>
    %9 = arith.mulf %8, %7 : vector<64x512xf32>
    %cst = arith.constant 0.000000e+00 : f32
    %10 = vector.broadcast %cst : f32 to vector<64x512xf32>
    %11 = arith.cmpf oge, %3, %10 : vector<64x512xf32>
    %12 = vector.broadcast %1 : f32 to vector<64x512xf32>
    %13 = arith.subf %12, %9 : vector<64x512xf32>
    %14 = arith.select %11, %9, %13 : vector<64x512xi1>, vector<64x512xf32>
    %c0_2 = arith.constant 0 : index
    %c0_3 = arith.constant 0 : index
    %15 = vector.load %arg3[%c0_2, %c0_3] : memref<64x512xf32, #tpu.memory_space<vmem>>, vector<64x512xf32>
    tpu.vector_store %arg3[%c0_2, %c0_3], %14 {strides = array<i32>} : memref<64x512xf32, #tpu.memory_space<vmem>>, vector<64x512xf32>,
    return
  }
  func.func @transform_0(%arg0: i32, %arg1: memref<3xf32, #tpu.memory_space<smem>>) -> (i32, i32) {
    %c0_i32 = arith.constant 0 : i32
    %c0_i32_0 = arith.constant 0 : i32
    return %arg0, %c0_i32 : i32, i32
  }
  func.func @transform_1(%arg0: i32, %arg1: memref<3xf32, #tpu.memory_space<smem>>) -> (i32, i32) {
    %c0_i32 = arith.constant 0 : i32
    %c0_i32_0 = arith.constant 0 : i32
    return %arg0, %c0_i32 : i32, i32
  }
}

</mosaic_0001>

<bundles_post_ra>
// kernel: tpu_custom_call.1
= control target key start
LH: loop header
LB: loop body
LE: loop exit
PB: predicated region body
PF: predicated region fallthrough
CT: control target
= control target key end

     0   :  { %s814_s12 = smov [#allocation3]   ;;  %s1315_s0 = inlined_call_operand.hbm [shape: f32[3], index: 0, kind: input, shape index: {}]   ;;  %s1316_s1 = inlined_call_operand.hbm [shape: f32[128,512], index: 1, kind: input, shape index: {}]   ;;  %s1317_s2 = inlined_call_operand.hbm [shape: f32[128,512], index: 2, kind: output, shape index: {}]  }
   0x1   :  { %s8_s11 = sshll.u32 %s1315_s0, 4  ;;  %s9_s11 = int_to_ptr.hbm [resolvable:$true] %s8_s11 }
   0x2   :  { %11 = dma.hbm_to_smem %s9_s11, 16, %s814_s12, [#allocation2] }
   0x3   :  { %788 = dma.done.wait [#allocation2], 16 }
   0x4   :  { %789 = vsyncadd [#allocation2], 4294967280 }
   0x5   :  { %14 = sfence }
   0x6   :  { %15 = vsyncpa [#allocation5], 0 }
   0x7   :  { %17 = vsyncpa [#allocation5 + $0x1], 0 }
   0x8   :  { %18 = vsyncpa [#allocation6], 0 }
   0x9   :  { %20 = vsyncpa [#allocation6 + $0x1], 0  ;;  %s837_s13 = smov 0   ;;  %s839_s14 = smov 0  }
   0xa   :  { %s841_s15 = smov 0   ;;  %s843_s16 = smov 0  }
   0xb LB: > { %s858_s0 = sadd.s32 4294967295, %s812_s16   ;;  %s565_s17 = sadd.s32 4294967294, %s812_s16   ;;  %s812_s16 = sphi %s843_s16, %s1327_s16   ;;  %s808_s15 = sphi %s841_s15, %s1326_s15   ;;  %s804_s14 = sphi %s839_s14, %s1325_s14   ;;  %s800_s13 = sphi %s837_s13, %s1324_s13  }
   0xc   : > { %s862_s18 = sadd.s32 1, %s812_s16   ;;  %s33_s19 = sadd.s32 1, %s808_s15 }
   0xd   : > { %s30_s20 = ssub.s32 %s812_s16, %s862_s18  ;;  %p40_p0 = scmp.ne.s32.totalorder %s808_s15, %s804_s14 }
   0xe   : > { %p31_p1 = scmp.eq.s32.totalorder %s30_s20, 0  ;;  %p41_p2 = scmp.eq.s32.totalorder %s812_s16, 0 }
   0xf   : > { %p46_p3 = scmp.ne.s32.totalorder %s804_s14, %s800_s13  ;;  %p47_p4 = scmp.eq.s32.totalorder %s858_s0, 0 }
  0x10   : > { %s874_s21 = scalar_select %p31_p1, %s808_s15, %s33_s19  }
  0x11   : > { %p876_p5 = por %p41_p2, %p40_p0  ;;  %p880_p6 = por %p47_p4, %p46_p3 }
  0x12   : > { %p70_p7 = scmp.eq.s32.totalorder %s858_s0, 1  ;;  %p76_p8 = scmp.eq.s32.totalorder %s565_s17, 1 }
  0x13   : > { %p599_p10 = scmp.lt.s32.totalorder %s812_s16, 2  ;;  %s96_s26 = sand.u32 1, %s808_s15  }
  0x14   : > { %p887_p11 = por %p70_p7, %p40_p0  ;;  %p891_p12 = por %p76_p8, %p46_p3 }
  0x15   : > { %s584_s27 = sshll.u32 %s812_s16, 8  ;;  %s568_s28 = sshll.u32 %s96_s26, 8 }
  0x16   : > { %s106_s3 = scalar_lea.hbm %s1316_s1, %s584_s27  ;;  %s100_s5 = scalar_lea.vmem [#allocation4], %s568_s28 }
  0x17   : > { %s107_s4 = sshll.u32 %s106_s3, 4  ;;  %s109_s6 = sshll.u32 %s100_s5, 4  ;;  %s108_s4 = int_to_ptr.hbm [resolvable:$true] %s107_s4  ;;  %s110_s6 = int_to_ptr.vmem [resolvable:$true] %s109_s6 }
  0x18   : > { %p902_p13 = pnand %p599_p10, %p876_p5  ;;  %p572_p0 = scmp.ge.s32.totalorder %s812_s16, 1 }
  0x19   : > { %p117_p1 = scmp.lt.s32.totalorder %s812_s16, 3  ;;  %s97_s8 = scalar_lea.sflag [#allocation5], %s96_s26 }
  0x1a   : > { %s714_s9 = sshra.s32 %s108_s4, 4  ;;  %p718_p3 = pneg %p902_p13  ;;  %s715_s9 = int_to_ptr.hbm [resolvable:$true] %s714_s9 }
  0x1b   : > { %s716_s10 = scalar_lea.hbm %s715_s9, 256  ;;  %s721_s17 = scalar_lea.hbm %s1316_s1, 512 }
  0x1c   : > { %p717_p2 = scmp.ne.s32.totalorder %s715_s9, %s716_s10  ;;  %p722_p5 = scmp.lt.s32.totalorder %s715_s9, %s1316_s1 }
  0x1d   : > { %p723_p8 = scmp.lt.s32.totalorder %s721_s17, %s716_s10 }
  0x1e   : > { %p719_p4 = pnand %p718_p3, %p717_p2 }
  0x1f   : > { %p724_p10 = por %p723_p8, %p722_p5 }
  0x20   : > { %p720_p7 = pneg %p719_p4 }
  0x22   : > { %p725_p9 = pnand %p724_p10, %p720_p7 }
  0x24   : > { %728 = shalt.err (!%p725_p9)
}
  0x25   : > { %s815_s22 = smov 512   ;;  %s816_s26 = smov 32  }
  0x26   : > { %594 = dma.hbm_to_vmem [thread:$0]  (!%p902_p13), %s108_s4, 4096, %s110_s6, %s97_s8, %s815_s22, %s815_s22, %s816_s26  }
  0x27   : > { %p118_p2 = pnand %p572_p0, %p117_p1 }
  0x28   : > { %s923_s27 = sand.u32 (!%p118_p2), 1, %s804_s14  }
  0x29   : > { %121 = sbr.rel (%p118_p2) target bundleno = 126 (0x7e), region = 24  ;;  %s573_s28 = sshll.u32 (!%p118_p2), %s923_s27, 8 }
  0x2a   : > { %s124_s29 = scalar_lea.sflag (!%p118_p2), [#allocation5], %s923_s27  ;;  %s929_s30 = scalar_lea.vmem (!%p118_p2), [#allocation4], %s573_s28 }
  0x2e   : > { %791 = dma.done.wait (%p880_p6), %s124_s29, 4096  }
  0x2f   : > { %793 = vsyncadd (%p880_p6), %s124_s29, 4294963200  ;;  %s576_s3 = sld [smem:[#allocation3 + $0x2]]  ;;  %v936_v0 = vld [vmem:[%s929_s30] sm:$0xff]  ;;  %v939_v1 = vld [vmem:[%s929_s30 + $0x8] sm:$0xff]  ;;  %s1027_s23 = scalar_lea.vmem [#allocation7], %s573_s28 }
  0x30   : > { %s149_s4 = sld [smem:[#allocation3]]  ;;  %v942_v2 = vld [vmem:[%s929_s30 + $0x10] sm:$0xff]  ;;  %v184_v3 = vand.u32 2147483647, %v936_v0  ;;  %v185_v4 = vand.u32 2147483647, %v939_v1 }
  0x31   : > { %s575_s5 = sld [smem:[#allocation3 + $0x1]]  ;;  %v947_v5 = vld [vmem:[%s929_s30 + $0x18] sm:$0xff]  ;;  %v186_v7 = vand.u32 2147483647, %v942_v2  ;;  %v953_v8 = vld [vmem:[%s929_s30 + $0x20] sm:$0xff]  ;;  %v956_v9 = vld [vmem:[%s929_s30 + $0x28] sm:$0xff] }
  0x32   : > { %v187_v12 = vand.u32 2147483647, %v947_v5  ;;  %v962_v13 = vld [vmem:[%s929_s30 + $0x30] sm:$0xff]  ;;  %v188_v15 = vand.u32 2147483647, %v953_v8  ;;  %v968_v17 = vld [vmem:[%s929_s30 + $0x38] sm:$0xff] }
  0x33   : > { %v189_v16 = vand.u32 2147483647, %v956_v9  ;;  %v190_v25 = vand.u32 2147483647, %v962_v13  ;;  %v977_v26 = vld [vmem:[%s929_s30 + $0x40] sm:$0xff]  ;;  %vm346_vm0 = vcmp.ge.f32.partialorder %v936_v0, 0.0 }
  0x34   : > { %v191_v29 = vand.u32 2147483647, %v968_v17  ;;  %v984_v30 = vld [vmem:[%s929_s30 + $0x48] sm:$0xff]  ;;  %vm347_vm1 = vcmp.ge.f32.partialorder %v939_v1, 0.0  ;;  %vm348_vm2 = vcmp.ge.f32.partialorder %v942_v2, 0.0  ;;  %v992_v36 = vld [vmem:[%s929_s30 + $0x50] sm:$0xff] }
  0x35   : > { %v949_v6 = vstv %s576_s3  ;;  %v192_v35 = vand.u32 2147483647, %v977_v26  ;;  %vm349_vm3 = vcmp.ge.f32.partialorder %v947_v5, 0.0  ;;  %v193_v38 = vand.u32 2147483647, %v984_v30  ;;  %v997_v39 = vld [vmem:[%s929_s30 + $0x58] sm:$0xff] }
  0x36   : > { %v217_v10 = vmul.f32 %v949_v6, %v184_v3  ;;  %v218_v11 = vmul.f32 %v949_v6, %v185_v4  ;;  %v219_v14 = vmul.f32 %v949_v6, %v186_v7  ;;  %v970_v19 = vstv %s149_s4  ;;  %v1005_v44 = vld [vmem:[%s929_s30 + $0x60] sm:$0xff]  ;;  %v1040_v1 = vld [vmem:[%s929_s30 + $0x68] sm:$0xff]  ;;  %v1049_v2 = vld [vmem:[%s929_s30 + $0x70] sm:$0xff]  ;;  %s586_s6 = sshll.u32 %s858_s0, 8  ;;  %s489_s9 = sshll.u32 %s1027_s23, 4  ;;  %s490_s9 = int_to_ptr.vmem [resolvable:$true] %s489_s9 }
  0x37   : > { %v220_v21 = vmul.f32 %v949_v6, %v187_v12  ;;  %v221_v23 = vmul.f32 %v949_v6, %v188_v15  ;;  %v222_v24 = vmul.f32 %v949_v6, %v189_v16  ;;  %v980_v27 = vstv %s575_s5  ;;  %s488_s8 = scalar_lea.hbm %s1317_s2, %s586_s6  ;;  %s476_s11 = scalar_lea.sflag [#allocation6], %s923_s27 }
  0x38   : > { %v249_v18 = vmul.f32 1.442695, %v217_v10  ;;  %v251_v20 = vmul.f32 1.442695, %v218_v11  ;;  %v253_v22 = vmul.f32 1.442695, %v219_v14  ;;  %v223_v33 = vmul.f32 %v949_v6, %v190_v25 }
  0x39   : > { %v255_v28 = vmul.f32 1.442695, %v220_v21  ;;  %v257_v31 = vmul.f32 1.442695, %v221_v23  ;;  %v259_v32 = vmul.f32 1.442695, %v222_v24  ;;  %v224_v34 = vmul.f32 %v949_v6, %v191_v29 }
  0x3a   : > { %638 = vpow2.f32 %v249_v18  ;;  %v261_v37 = vmul.f32 1.442695, %v223_v33  ;;  %vm350_vm4 = vcmp.ge.f32.partialorder %v953_v8, 0.0  ;;  %v225_v41 = vmul.f32 %v949_v6, %v192_v35  ;;  %s491_s10 = sshll.u32 %s488_s8, 4  ;;  %s764_s22 = scalar_lea.hbm %s1317_s2, 512  ;;  %s492_s10 = int_to_ptr.hbm [resolvable:$true] %s491_s10 }
  0x3b   : > { %640 = vpow2.f32 %v251_v20  ;;  %v263_v40 = vmul.f32 1.442695, %v224_v34  ;;  %vm351_vm5 = vcmp.ge.f32.partialorder %v956_v9, 0.0  ;;  %v226_v42 = vmul.f32 %v949_v6, %v193_v38  ;;  %s758_s12 = sshra.s32 %s492_s10, 4  ;;  %s759_s12 = int_to_ptr.hbm [resolvable:$true] %s758_s12 }
  0x3c   : > { %642 = vpow2.f32 %v253_v22  ;;  %v194_v43 = vand.u32 2147483647, %v992_v36  ;;  %vm352_vm6 = vcmp.ge.f32.partialorder %v962_v13, 0.0  ;;  %v265_v46 = vmul.f32 1.442695, %v225_v41  ;;  %v1069_v41 = vld [vmem:[%s929_s30 + $0x78] sm:$0xff]  ;;  %p765_p0 = scmp.lt.s32.totalorder %s759_s12, %s1317_s2 }
  0x3d   : > { %644 = vpow2.f32 %v255_v28  ;;  %v195_v47 = vand.u32 2147483647, %v997_v39  ;;  %vm353_vm7 = vcmp.ge.f32.partialorder %v968_v17, 0.0  ;;  %v267_v50 = vmul.f32 1.442695, %v226_v42  ;;  %s760_s17 = scalar_lea.hbm %s759_s12, 256 }
  0x3e   : > { %646 = vpow2.f32 %v257_v31  ;;  %v227_v51 = vmul.f32 %v949_v6, %v194_v43  ;;  %vm354_vm8 = vcmp.ge.f32.partialorder %v977_v26, 0.0  ;;  %v196_v55 = vand.u32 2147483647, %v1005_v44  ;;  %p761_p6 = scmp.ne.s32.totalorder %s759_s12, %s760_s17  ;;  %p766_p1 = scmp.lt.s32.totalorder %s764_s22, %s760_s17 }
  0x3f   : > { %648 = vpow2.f32 %v259_v32  ;;  %v228_v54 = vmul.f32 %v949_v6, %v195_v47  ;;  %vm355_vm9 = vcmp.ge.f32.partialorder %v984_v30, 0.0  ;;  %v197_v8 = vand.u32 2147483647, %v1040_v1  ;;  %v1078_v47 = vld [vmem:[%s929_s30 + $0x80] sm:$0xff] }
  0x40   : > { %v639_v45 = vpop.eup %638  ;;  %650 = vpow2.f32 %v261_v37  ;;  %v269_v59 = vmul.f32 1.442695, %v227_v51  ;;  %v229_v3 = vmul.f32 %v949_v6, %v196_v55  ;;  %vm356_vm10 = vcmp.ge.f32.partialorder %v992_v36, 0.0  ;;  %v1110_v36 = vld [vmem:[%s929_s30 + $0x98] sm:$0xff]  ;;  %p762_p9 = pnand %p761_p6, %p887_p11  ;;  %p767_p3 = por %p766_p1, %p765_p0 }
  0x41   : > { %v641_v48 = vpop.eup %640  ;;  %v314_v49 = vmul.f32 %v639_v45, %v970_v19  ;;  %652 = vpow2.f32 %v263_v40  ;;  %v271_v63 = vmul.f32 1.442695, %v228_v54  ;;  %v198_v9 = vand.u32 2147483647, %v1049_v2 }
  0x42   : > { %v643_v52 = vpop.eup %642  ;;  %v315_v53 = vmul.f32 %v641_v48, %v970_v19  ;;  %654 = vpow2.f32 %v265_v46  ;;  %v273_v22 = vmul.f32 1.442695, %v229_v3  ;;  %v230_v46 = vmul.f32 %v949_v6, %v197_v8  ;;  %v1145_v8 = vld [vmem:[%s929_s30 + $0xb8] sm:$0xff]  ;;  %p763_p13 = pneg %p762_p9 }
  0x43   : > { %v645_v56 = vpop.eup %644  ;;  %v379_v57 = vsub.f32 %v980_v27, %v314_v49  ;;  %v316_v58 = vmul.f32 %v643_v52, %v970_v19  ;;  %656 = vpow2.f32 %v267_v50  ;;  %vm357_vm11 = vcmp.ge.f32.partialorder %v997_v39, 0.0 }
  0x44   : > { %v647_v60 = vpop.eup %646  ;;  %v380_v61 = vsub.f32 %v980_v27, %v315_v53  ;;  %v317_v62 = vmul.f32 %v645_v56, %v970_v19  ;;  %658 = vpow2.f32 %v269_v59  ;;  %v231_v17 = vmul.f32 %v949_v6, %v198_v9  ;;  %v1150_v9 = vld [vmem:[%s929_s30 + $0xc0] sm:$0xff]  ;;  %p768_p4 = pnand %p767_p3, %p763_p13 }
  0x45   : > { %v649_v4 = vpop.eup %648  ;;  %v411_v7 = vsel %vm346_vm0, %v314_v49, %v379_v57  ;;  %v381_v10 = vsub.f32 %v980_v27, %v316_v58  ;;  %v318_v11 = vmul.f32 %v647_v60, %v970_v19  ;;  %660 = vpow2.f32 %v271_v63  ;;  %v1095_v57 = vld [vmem:[%s929_s30 + $0x88] sm:$0xff]  ;;  %v1102_v60 = vld [vmem:[%s929_s30 + $0x90] sm:$0xff]  ;;  %v1113_v63 = vld [vmem:[%s929_s30 + $0xa0] sm:$0xff] }
  0x46   : > { %v651_v12 = vpop.eup %650  ;;  %443 = vst [vmem:[%s1027_s23] sm:$0xff] %v411_v7  ;;  %v412_v14 = vsel %vm347_vm1, %v315_v53, %v380_v61  ;;  %v382_v0 = vsub.f32 %v980_v27, %v317_v62  ;;  %v319_v15 = vmul.f32 %v649_v4, %v970_v19  ;;  %662 = vpow2.f32 %v273_v22 }
  0x47   : > { %v653_v16 = vpop.eup %652  ;;  %444 = vst [vmem:[%s1027_s23 + $0x8] sm:$0xff] %v412_v14  ;;  %v413_v18 = vsel %vm348_vm2, %v316_v58, %v381_v10  ;;  %v383_v20 = vsub.f32 %v980_v27, %v318_v11  ;;  %v320_v21 = vmul.f32 %v651_v12, %v970_v19  ;;  %v275_v52 = vmul.f32 1.442695, %v230_v46  ;;  %v1119_v10 = vld [vmem:[%s929_s30 + $0xa8] sm:$0xff] }
  0x48   : > { %v655_v23 = vpop.eup %654  ;;  %445 = vst [vmem:[%s1027_s23 + $0x10] sm:$0xff] %v413_v18  ;;  %v414_v24 = vsel %vm349_vm3, %v317_v62, %v382_v0  ;;  %v384_v25 = vsub.f32 %v980_v27, %v319_v15  ;;  %v321_v28 = vmul.f32 %v653_v16, %v970_v19  ;;  %v199_v53 = vand.u32 2147483647, %v1069_v41  ;;  %v1127_v0 = vld [vmem:[%s929_s30 + $0xb0] sm:$0xff]  ;;  %v1156_v46 = vld [vmem:[%s929_s30 + $0xc8] sm:$0xff] }
  0x49   : > { %v657_v29 = vpop.eup %656  ;;  %446 = vst [vmem:[%s1027_s23 + $0x18] sm:$0xff] %v414_v24  ;;  %v415_v31 = vsel %vm350_vm4, %v318_v11, %v383_v20  ;;  %v385_v32 = vsub.f32 %v980_v27, %v320_v21  ;;  %v322_v5 = vmul.f32 %v655_v23, %v970_v19  ;;  %v277_v55 = vmul.f32 1.442695, %v231_v17 }
  0x4a   : > { %447 = vst [vmem:[%s1027_s23 + $0x20] sm:$0xff] %v415_v31  ;;  %v416_v33 = vsel %vm351_vm5, %v319_v15, %v384_v25  ;;  %v386_v34 = vsub.f32 %v980_v27, %v321_v28  ;;  %v323_v35 = vmul.f32 %v657_v29, %v970_v19  ;;  %v659_v37 = vpop.eup %658  ;;  %v200_v56 = vand.u32 2147483647, %v1078_v47 }
  0x4b   : > { %448 = vst [vmem:[%s1027_s23 + $0x28] sm:$0xff] %v416_v33  ;;  %v417_v38 = vsel %vm352_vm6, %v320_v21, %v385_v32  ;;  %v387_v40 = vsub.f32 %v980_v27, %v322_v5  ;;  %v661_v42 = vpop.eup %660  ;;  %v324_v13 = vmul.f32 %v659_v37, %v970_v19  ;;  %664 = vpow2.f32 %v275_v52 }
  0x4c   : > { %449 = vst [vmem:[%s1027_s23 + $0x30] sm:$0xff] %v417_v38  ;;  %v418_v43 = vsel %vm353_vm7, %v321_v28, %v386_v34  ;;  %v388_v45 = vsub.f32 %v980_v27, %v323_v35  ;;  %v325_v49 = vmul.f32 %v661_v42, %v970_v19  ;;  %v663_v54 = vpop.eup %662  ;;  %v232_v59 = vmul.f32 %v949_v6, %v199_v53 }
  0x4d   : > { %450 = vst [vmem:[%s1027_s23 + $0x38] sm:$0xff] %v418_v43  ;;  %v419_v48 = vsel %vm354_vm8, %v322_v5, %v387_v40  ;;  %v389_v51 = vsub.f32 %v980_v27, %v324_v13  ;;  %v326_v58 = vmul.f32 %v663_v54, %v970_v19  ;;  %vm358_vm12 = vcmp.ge.f32.partialorder %v1005_v44, 0.0  ;;  %v1172_v54 = vld [vmem:[%s929_s30 + $0xd0] sm:$0xff] }
  0x4e   : > { %451 = vst [vmem:[%s1027_s23 + $0x40] sm:$0xff] %v419_v48  ;;  %v420_v50 = vsel %vm355_vm9, %v323_v35, %v388_v45  ;;  %v390_v26 = vsub.f32 %v980_v27, %v325_v49  ;;  %666 = vpow2.f32 %v277_v55  ;;  %v233_v62 = vmul.f32 %v949_v6, %v200_v56 }
  0x4f   : > { %452 = vst [vmem:[%s1027_s23 + $0x48] sm:$0xff] %v420_v50  ;;  %v421_v30 = vsel %vm356_vm10, %v324_v13, %v389_v51  ;;  %v391_v3 = vsub.f32 %v980_v27, %v326_v58  ;;  %v279_v4 = vmul.f32 1.442695, %v232_v59  ;;  %v201_v7 = vand.u32 2147483647, %v1095_v57 }
  0x50   : > { %453 = vst [vmem:[%s1027_s23 + $0x50] sm:$0xff] %v421_v30  ;;  %v422_v61 = vsel %vm357_vm11, %v325_v49, %v390_v26  ;;  %vm359_vm13 = vcmp.ge.f32.partialorder %v1040_v1, 0.0  ;;  %vm360_vm14 = vcmp.ge.f32.partialorder %v1049_v2, 0.0  ;;  %v281_v39 = vmul.f32 1.442695, %v233_v62 }
  0x51   : > { %454 = vst [vmem:[%s1027_s23 + $0x58] sm:$0xff] %v422_v61  ;;  %v202_v44 = vand.u32 2147483647, %v1102_v60  ;;  %v423_v11 = vsel %vm358_vm12, %v326_v58, %v391_v3  ;;  %668 = vpow2.f32 %v279_v4  ;;  %v234_v12 = vmul.f32 %v949_v6, %v201_v7  ;;  %v665_v18 = vpop.eup %664 }
  0x52   : > { %v203_v14 = vand.u32 2147483647, %v1110_v36  ;;  %455 = vst [vmem:[%s1027_s23 + $0x60] sm:$0xff] %v423_v11  ;;  %vm361_vm15 = vcmp.ge.f32.partialorder %v1069_v41, 0.0  ;;  %670 = vpow2.f32 %v281_v39  ;;  %v204_v16 = vand.u32 2147483647, %v1113_v63 }
  0x53   : > { %v235_v15 = vmul.f32 %v949_v6, %v202_v44  ;;  %vm362_vm0 = vcmp.ge.f32.partialorder %v1078_v47, 0.0  ;;  %v283_v20 = vmul.f32 1.442695, %v234_v12  ;;  %v205_v22 = vand.u32 2147483647, %v1119_v10 }
  0x54   : > { %v236_v21 = vmul.f32 %v949_v6, %v203_v14  ;;  %v667_v23 = vpop.eup %666  ;;  %v327_v24 = vmul.f32 %v665_v18, %v970_v19  ;;  %v237_v28 = vmul.f32 %v949_v6, %v204_v16  ;;  %v206_v29 = vand.u32 2147483647, %v1127_v0 }
  0x55   : > { %v285_v25 = vmul.f32 1.442695, %v235_v15  ;;  %v328_v31 = vmul.f32 %v667_v23, %v970_v19  ;;  %672 = vpow2.f32 %v283_v20  ;;  %vm363_vm1 = vcmp.ge.f32.partialorder %v1095_v57, 0.0 }
  0x56   : > { %v287_v32 = vmul.f32 1.442695, %v236_v21  ;;  %v238_v5 = vmul.f32 %v949_v6, %v205_v22  ;;  %v392_v33 = vsub.f32 %v980_v27, %v327_v24  ;;  %v289_v34 = vmul.f32 1.442695, %v237_v28  ;;  %v1195_v21 = vld [vmem:[%s929_s30 + $0xd8] sm:$0xff] }
  0x57   : > { %674 = vpow2.f32 %v285_v25  ;;  %v239_v35 = vmul.f32 %v949_v6, %v206_v29  ;;  %v669_v37 = vpop.eup %668  ;;  %v393_v38 = vsub.f32 %v980_v27, %v328_v31  ;;  %vm364_vm2 = vcmp.ge.f32.partialorder %v1102_v60, 0.0  ;;  %v1212_v29 = vld [vmem:[%s929_s30 + $0xe8] sm:$0xff] }
  0x58   : > { %676 = vpow2.f32 %v287_v32  ;;  %v291_v40 = vmul.f32 1.442695, %v238_v5  ;;  %v671_v42 = vpop.eup %670  ;;  %v424_v43 = vsel %vm359_vm13, %v327_v24, %v392_v33  ;;  %v329_v45 = vmul.f32 %v669_v37, %v970_v19  ;;  %v1203_v24 = vld [vmem:[%s929_s30 + $0xe0] sm:$0xff] }
  0x59   : > { %678 = vpow2.f32 %v289_v34  ;;  %v293_v13 = vmul.f32 1.442695, %v239_v35  ;;  %456 = vst [vmem:[%s1027_s23 + $0x68] sm:$0xff] %v424_v43  ;;  %v425_v48 = vsel %vm360_vm14, %v328_v31, %v393_v38  ;;  %v330_v49 = vmul.f32 %v671_v42, %v970_v19 }
  0x5a   : > { %680 = vpow2.f32 %v291_v40  ;;  %v207_v17 = vand.u32 2147483647, %v1145_v8  ;;  %457 = vst [vmem:[%s1027_s23 + $0x70] sm:$0xff] %v425_v48  ;;  %v394_v1 = vsub.f32 %v980_v27, %v329_v45  ;;  %vm365_vm3 = vcmp.ge.f32.partialorder %v1110_v36, 0.0  ;;  %v1220_v36 = vld [vmem:[%s929_s30 + $0xf0] sm:$0xff] }
  0x5b   : > { %682 = vpow2.f32 %v293_v13  ;;  %v208_v50 = vand.u32 2147483647, %v1150_v9  ;;  %v673_v51 = vpop.eup %672  ;;  %v395_v52 = vsub.f32 %v980_v27, %v330_v49  ;;  %vm366_vm4 = vcmp.ge.f32.partialorder %v1113_v63, 0.0 }
  0x5c   : > { %v240_v2 = vmul.f32 %v949_v6, %v207_v17  ;;  %v209_v53 = vand.u32 2147483647, %v1156_v46  ;;  %v426_v55 = vsel %vm361_vm15, %v329_v45, %v394_v1  ;;  %v331_v56 = vmul.f32 %v673_v51, %v970_v19  ;;  %v1236_v45 = vld [vmem:[%s929_s30 + $0xf8] sm:$0xff] }
  0x5d   : > { %v675_v26 = vpop.eup %674  ;;  %vm367_vm5 = vcmp.ge.f32.partialorder %v1119_v10, 0.0  ;;  %v241_v30 = vmul.f32 %v949_v6, %v208_v50  ;;  %458 = vst [vmem:[%s1027_s23 + $0x78] sm:$0xff] %v426_v55  ;;  %v427_v59 = vsel %vm362_vm0, %v330_v49, %v395_v52  ;;  %v210_v44 = vand.u32 2147483647, %v1172_v54 }
  0x5e   : > { %v677_v58 = vpop.eup %676  ;;  %v332_v61 = vmul.f32 %v675_v26, %v970_v19  ;;  %v295_v62 = vmul.f32 1.442695, %v240_v2  ;;  %v242_v3 = vmul.f32 %v949_v6, %v209_v53  ;;  %459 = vst [vmem:[%s1027_s23 + $0x80] sm:$0xff] %v427_v59  ;;  %v396_v41 = vsub.f32 %v980_v27, %v331_v56 }
  0x5f   : > { %v679_v4 = vpop.eup %678  ;;  %v333_v7 = vmul.f32 %v677_v58, %v970_v19  ;;  %v297_v39 = vmul.f32 1.442695, %v241_v30  ;;  %vm368_vm6 = vcmp.ge.f32.partialorder %v1127_v0, 0.0  ;;  %v243_v60 = vmul.f32 %v949_v6, %v210_v44 }
  0x60   : > { %v681_v11 = vpop.eup %680  ;;  %v397_v47 = vsub.f32 %v980_v27, %v332_v61  ;;  %v334_v12 = vmul.f32 %v679_v4, %v970_v19  ;;  %684 = vpow2.f32 %v295_v62  ;;  %v299_v14 = vmul.f32 1.442695, %v242_v3 }
  0x61   : > { %v683_v15 = vpop.eup %682  ;;  %v428_v16 = vsel %vm363_vm1, %v331_v56, %v396_v41  ;;  %v398_v18 = vsub.f32 %v980_v27, %v333_v7  ;;  %v335_v20 = vmul.f32 %v681_v11, %v970_v19  ;;  %686 = vpow2.f32 %v297_v39 }
  0x62   : > { %460 = vst [vmem:[%s1027_s23 + $0x88] sm:$0xff] %v428_v16  ;;  %v429_v22 = vsel %vm364_vm2, %v332_v61, %v397_v47  ;;  %v399_v23 = vsub.f32 %v980_v27, %v334_v12  ;;  %v336_v57 = vmul.f32 %v683_v15, %v970_v19  ;;  %688 = vpow2.f32 %v299_v14 }
  0x63   : > { %461 = vst [vmem:[%s1027_s23 + $0x90] sm:$0xff] %v429_v22  ;;  %v430_v25 = vsel %vm365_vm3, %v333_v7, %v398_v18  ;;  %v400_v28 = vsub.f32 %v980_v27, %v335_v20  ;;  %v211_v5 = vand.u32 2147483647, %v1195_v21  ;;  %vm369_vm7 = vcmp.ge.f32.partialorder %v1145_v8, 0.0 }
  0x64   : > { %462 = vst [vmem:[%s1027_s23 + $0x98] sm:$0xff] %v430_v25  ;;  %v431_v31 = vsel %vm366_vm4, %v334_v12, %v399_v23  ;;  %v401_v32 = vsub.f32 %v980_v27, %v336_v57  ;;  %v301_v0 = vmul.f32 1.442695, %v243_v60  ;;  %v212_v34 = vand.u32 2147483647, %v1203_v24 }
  0x65   : > { %463 = vst [vmem:[%s1027_s23 + $0xa0] sm:$0xff] %v431_v31  ;;  %v432_v33 = vsel %vm367_vm5, %v335_v20, %v400_v28  ;;  %vm370_vm8 = vcmp.ge.f32.partialorder %v1150_v9, 0.0  ;;  %v244_v37 = vmul.f32 %v949_v6, %v211_v5  ;;  %v213_v38 = vand.u32 2147483647, %v1212_v29 }
  0x66   : > { %v685_v35 = vpop.eup %684  ;;  %464 = vst [vmem:[%s1027_s23 + $0xa8] sm:$0xff] %v432_v33  ;;  %v433_v63 = vsel %vm368_vm6, %v336_v57, %v401_v32  ;;  %690 = vpow2.f32 %v301_v0  ;;  %v245_v42 = vmul.f32 %v949_v6, %v212_v34  ;;  %v214_v43 = vand.u32 2147483647, %v1220_v36 }
  0x67   : > { %v687_v40 = vpop.eup %686  ;;  %465 = vst [vmem:[%s1027_s23 + $0xb0] sm:$0xff] %v433_v63  ;;  %v337_v10 = vmul.f32 %v685_v35, %v970_v19  ;;  %vm371_vm9 = vcmp.ge.f32.partialorder %v1156_v46, 0.0  ;;  %v303_v49 = vmul.f32 1.442695, %v244_v37  ;;  %v246_v17 = vmul.f32 %v949_v6, %v213_v38 }
  0x68   : > { %v689_v13 = vpop.eup %688  ;;  %v338_v48 = vmul.f32 %v687_v40, %v970_v19  ;;  %v305_v51 = vmul.f32 1.442695, %v245_v42  ;;  %v247_v52 = vmul.f32 %v949_v6, %v214_v43  ;;  %v215_v26 = vand.u32 2147483647, %v1236_v45 }
  0x69   : > { %v402_v1 = vsub.f32 %v980_v27, %v337_v10  ;;  %v339_v50 = vmul.f32 %v689_v13, %v970_v19  ;;  %692 = vpow2.f32 %v303_v49  ;;  %v307_v53 = vmul.f32 1.442695, %v246_v17 }
  0x6a   : > { %v403_v2 = vsub.f32 %v980_v27, %v338_v48  ;;  %694 = vpow2.f32 %v305_v51  ;;  %v309_v30 = vmul.f32 1.442695, %v247_v52  ;;  %v248_v59 = vmul.f32 %v949_v6, %v215_v26 }
  0x6b   : > { %v434_v55 = vsel %vm369_vm7, %v337_v10, %v402_v1  ;;  %v404_v56 = vsub.f32 %v980_v27, %v339_v50  ;;  %696 = vpow2.f32 %v307_v53  ;;  %vm372_vm10 = vcmp.ge.f32.partialorder %v1172_v54, 0.0 }
  0x6c   : > { %466 = vst [vmem:[%s1027_s23 + $0xb8] sm:$0xff] %v434_v55  ;;  %v435_v58 = vsel %vm370_vm8, %v338_v48, %v403_v2  ;;  %v691_v61 = vpop.eup %690  ;;  %698 = vpow2.f32 %v309_v30  ;;  %v311_v3 = vmul.f32 1.442695, %v248_v59  ;;  %vm373_vm11 = vcmp.ge.f32.partialorder %v1195_v21, 0.0 }
  0x6d   : > { %467 = vst [vmem:[%s1027_s23 + $0xc0] sm:$0xff] %v435_v58  ;;  %v436_v62 = vsel %vm371_vm9, %v339_v50, %v404_v56  ;;  %v340_v8 = vmul.f32 %v691_v61, %v970_v19  ;;  %vm374_vm12 = vcmp.ge.f32.partialorder %v1203_v24, 0.0  ;;  %vm375_vm13 = vcmp.ge.f32.partialorder %v1212_v29, 0.0 }
  0x6e   : > { %468 = vst [vmem:[%s1027_s23 + $0xc8] sm:$0xff] %v436_v62  ;;  %700 = vpow2.f32 %v311_v3  ;;  %vm376_vm14 = vcmp.ge.f32.partialorder %v1220_v36, 0.0  ;;  %vm377_vm15 = vcmp.ge.f32.partialorder %v1236_v45, 0.0 }
  0x6f   : > { %v693_v4 = vpop.eup %692  ;;  %v405_v9 = vsub.f32 %v980_v27, %v340_v8 }
  0x70   : > { %v695_v41 = vpop.eup %694  ;;  %v341_v6 = vmul.f32 %v693_v4, %v970_v19 }
  0x71   : > { %v697_v7 = vpop.eup %696  ;;  %v437_v39 = vsel %vm372_vm10, %v340_v8, %v405_v9  ;;  %v342_v46 = vmul.f32 %v695_v41, %v970_v19 }
  0x72   : > { %v699_v44 = vpop.eup %698  ;;  %469 = vst [vmem:[%s1027_s23 + $0xd0] sm:$0xff] %v437_v39  ;;  %v406_v54 = vsub.f32 %v980_v27, %v341_v6  ;;  %v343_v11 = vmul.f32 %v697_v7, %v970_v19 }
  0x73   : > { %v407_v47 = vsub.f32 %v980_v27, %v342_v46  ;;  %v344_v12 = vmul.f32 %v699_v44, %v970_v19 }
  0x74   : > { %v438_v14 = vsel %vm373_vm11, %v341_v6, %v406_v54  ;;  %v408_v15 = vsub.f32 %v980_v27, %v343_v11  ;;  %v701_v16 = vpop.eup %700 }
  0x75   : > { %470 = vst [vmem:[%s1027_s23 + $0xd8] sm:$0xff] %v438_v14  ;;  %v439_v18 = vsel %vm374_vm12, %v342_v46, %v407_v47  ;;  %v409_v20 = vsub.f32 %v980_v27, %v344_v12  ;;  %v345_v22 = vmul.f32 %v701_v16, %v970_v19 }
  0x76   : > { %471 = vst [vmem:[%s1027_s23 + $0xe0] sm:$0xff] %v439_v18  ;;  %v440_v21 = vsel %vm375_vm13, %v343_v11, %v408_v15 }
  0x77   : > { %472 = vst [vmem:[%s1027_s23 + $0xe8] sm:$0xff] %v440_v21  ;;  %v441_v23 = vsel %vm376_vm14, %v344_v12, %v409_v20  ;;  %v410_v57 = vsub.f32 %v980_v27, %v345_v22 }
  0x78   : > { %473 = vst [vmem:[%s1027_s23 + $0xf0] sm:$0xff] %v441_v23 }
  0x79   : > { %v442_v24 = vsel %vm377_vm15, %v345_v22, %v410_v57 }
  0x7a   : > { %474 = vst [vmem:[%s1027_s23 + $0xf8] sm:$0xff] %v442_v24 }
  0x7b   : > { %771 = shalt.err (!%p768_p4)
}
  0x7c   : > { %s817_s27 = smov 512   ;;  %s818_s29 = smov 32  }
  0x7d   : > { %589 = dma.vmem_to_hbm [thread:$0]  (%p887_p11), %s490_s9, 4096, %s492_s10, %s476_s11, %s817_s27, %s817_s27, %s818_s29  }
  0x7e PF: > { %s506_s30 = sand.u32 1, %s800_s13   ;;  %p1323_p7 = scmp.ge.s32.totalorder %s812_s16, 2 }
  0x7f   : > { %s507_s3 = scalar_lea.sflag [#allocation6], %s506_s30 }
  0x80   : > { %p596_p5 = pnand %p1323_p7, %p891_p12 }
  0x82   : > { %p597_p8 = pneg %p596_p5 }
  0x84   : > { %795 = dma.done.wait (%p597_p8), %s507_s3, 4096  }
  0x85   : > { %797 = vsyncadd (%p597_p8), %s507_s3, 4294963200  ;;  %p23_p10 = scmp.ge.s32.totalorder %s862_s18, 4   ;;  %s1324_s13 = smov %s804_s14 }
  0x86   : > { %s1325_s14 = smov %s808_s15  ;;  %s1326_s15 = smov %s874_s21 }
  0x87   : > { %s1327_s16 = smov %s862_s18  ;;  %25 = sbr.rel (!%p23_p10) target bundleno = 11 (0xb), region = 69 }
  0x8c   :  { %513 = vsyncpa [#allocation5], 1 }
  0x8d   :  { %515 = vsyncpa [#allocation5 + $0x1], 1 }
  0x8e   :  { %516 = vsyncpa [#allocation6], 1 }
  0x8f   :  { %518 = vsyncpa [#allocation6 + $0x1], 1 }

</bundles_post_ra>
